<compile_context>
chip_gen: v7x
topology: tpu7x:2x2x1
jax: 0.10.0
libtpu: 0.0.40
codegen_flags: <defaults>
</compile_context>

<pallas_src>
import functools

import jax
import jax.numpy as jnp
from jax.experimental import pallas as pl
from jax.experimental.pallas import tpu as pltpu

NEG_SLOPE = 0.01  # nn.LeakyReLU() default negative_slope


def _round_up(n, m):
    return ((n + m - 1) // m) * m


def _leaky_relu(x):
    return jnp.where(x >= 0, x, NEG_SLOPE * x)


def mlp_kernel(x_ref, w1_ref, b1_ref, w2_ref, b2_ref, w3_ref, b3_ref, o_ref):
    # Layer 1: (TB, InP)bf16 @ (InP, HP)bf16 -> f32 acc; bias + LeakyReLU in f32.
    h = jnp.dot(x_ref[...], w1_ref[...], preferred_element_type=jnp.float32)
    h = _leaky_relu(h + b1_ref[...])
    # Layer 2: cast activations back to bf16 for the MXU, accumulate in f32.
    h = jnp.dot(h.astype(jnp.bfloat16), w2_ref[...],
                preferred_element_type=jnp.float32)
    h = _leaky_relu(h + b2_ref[...])
    # Layer 3.
    h = jnp.dot(h.astype(jnp.bfloat16), w3_ref[...],
                preferred_element_type=jnp.float32)
    h = _leaky_relu(h + b3_ref[...])
    o_ref[...] = h.astype(o_ref.dtype)


@functools.partial(jax.jit, static_argnames=("block_batch",))
def mlp_forward(x, params, *, block_batch=None):
    """x: (B, input_size) f32.  params: f32 weights (in,out) and biases (1,out)."""
    w1, b1, w2, b2, w3, b3 = params
    B, In = x.shape
    H = w1.shape[1]
    Out = w3.shape[1]

    # Lane-dense (multiple-of-128) padded feature dims.
    InP, HP, OutP = (_round_up(d, 128) for d in (In, H, Out))

    # Batch tile: multiple of 8 (sublane), large enough to amortize the
    # ~0.35us/step grid overhead, capped so the double-buffered x/out tiles
    # stay small next to the resident weights.
    if block_batch is None:
        TB = 256 if B >= 256 else _round_up(max(B, 1), 8)
    else:
        TB = _round_up(block_batch, 8)
    Bp = _round_up(B, TB)
    grid = (Bp // TB,)

    # ---- pad + cast operands ------------------------------------------------
    def pad_w(w, r, c):  # bf16 MXU operands
        return jnp.zeros((r, c), jnp.bfloat16).at[:w.shape[0], :w.shape[1]].set(
            w.astype(jnp.bfloat16))

    def pad_b(b, c):     # biases stay f32 (added to the f32 accumulator)
        return jnp.zeros((1, c), jnp.float32).at[:, :b.shape[1]].set(
            b.astype(jnp.float32))

    xp = jnp.zeros((Bp, InP), jnp.bfloat16).at[:B, :In].set(
        x.astype(jnp.bfloat16))
    w1p, b1p = pad_w(w1, InP, HP), pad_b(b1, HP)
    w2p, b2p = pad_w(w2, HP, HP), pad_b(b2, HP)
    w3p, b3p = pad_w(w3, HP, OutP), pad_b(b3, OutP)

    # ---- explicit VMEM budget -----------------------------------------------
    bf16_b, f32_b = 2, 4
    weight_bytes = (InP * HP + HP * HP + HP * OutP) * bf16_b \
        + (HP + HP + OutP) * f32_b
    io_bytes = 2 * (TB * InP * bf16_b + TB * OutP * f32_b)   # double-buffered tiles
    act_bytes = 2 * TB * HP * f32_b                          # live f32 activations
    est = weight_bytes + io_bytes + act_bytes
    # Clamp into a range safe on v5e (16 MiB default scoped), v6e (128 MiB
    # physical) and v7x (64 MiB physical).
    vmem_limit = int(min(max(2 * est, 16 * 2**20), 40 * 2**20))
    # TODO(synk): for production hidden sizes where the three weight matrices
    # no longer fit in VMEM, tile fc2's contraction over a trailing
    # "arbitrary" K grid axis with an f32 VMEM accumulator.

    out = pl.pallas_call(
        mlp_kernel,
        out_shape=jax.ShapeDtypeStruct((Bp, OutP), jnp.float32),
        grid=grid,
        in_specs=[
            pl.BlockSpec((TB, InP), lambda i: (i, 0)),   # x tile (pipelined)
            pl.BlockSpec((InP, HP), lambda i: (0, 0)),   # w1 (resident)
            pl.BlockSpec((1, HP), lambda i: (0, 0)),     # b1
            pl.BlockSpec((HP, HP), lambda i: (0, 0)),    # w2
            pl.BlockSpec((1, HP), lambda i: (0, 0)),     # b2
            pl.BlockSpec((HP, OutP), lambda i: (0, 0)),  # w3
            pl.BlockSpec((1, OutP), lambda i: (0, 0)),   # b3
        ],
        out_specs=pl.BlockSpec((TB, OutP), lambda i: (i, 0)),
        compiler_params=pltpu.CompilerParams(
            dimension_semantics=("parallel",),
            vmem_limit_bytes=vmem_limit,
        ),
    )(xp, w1p, b1p, w2p, b2p, w3p, b3p)

    return out[:B, :Out].astype(x.dtype)


def init_mlp_params(key, input_size, hidden_size, output_size):
    """Deterministic init mimicking PyTorch nn.Linear defaults:
    U(-1/sqrt(fan_in), 1/sqrt(fan_in)) for both weights and biases.
    Weights stored as (in_features, out_features)."""
    def linear(k, fan_in, fan_out):
        kw, kb = jax.random.split(k)
        bound = 1.0 / jnp.sqrt(fan_in)
        w = jax.random.uniform(kw, (fan_in, fan_out), jnp.float32, -bound, bound)
        b = jax.random.uniform(kb, (1, fan_out), jnp.float32, -bound, bound)
        return w, b

    k1, k2, k3 = jax.random.split(key, 3)
    w1, b1 = linear(k1, input_size, hidden_size)
    w2, b2 = linear(k2, hidden_size, hidden_size)
    w3, b3 = linear(k3, hidden_size, output_size)
    return (w1, b1, w2, b2, w3, b3)


def mlp_reference(x, params):
    """Precision-matched reference: bf16 matmul operands, f32 accumulation,
    f32 bias + LeakyReLU (same math as the kernel, plain JAX)."""
    w1, b1, w2, b2, w3, b3 = params
    bf = lambda a: a.astype(jnp.bfloat16)
    h = jax.nn.leaky_relu(
        jnp.dot(bf(x), bf(w1), preferred_element_type=jnp.float32) + b1, NEG_SLOPE)
    h = jax.nn.leaky_relu(
        jnp.dot(bf(h), bf(w2), preferred_element_type=jnp.float32) + b2, NEG_SLOPE)
    h = jax.nn.leaky_relu(
        jnp.dot(bf(h), bf(w3), preferred_element_type=jnp.float32) + b3, NEG_SLOPE)
    return h


if __name__ == "__main__":
    key = jax.random.PRNGKey(0)
    kx, kp = jax.random.split(key)

    # Small shapes consistent with the module; batch chosen so the grid has
    # more than one step with block_batch=32 (exercises the pipelined path).
    batch, input_size, hidden_size, output_size = 64, 32, 64, 16
    x = jax.random.normal(kx, (batch, input_size), jnp.float32)
    params = init_mlp_params(kp, input_size, hidden_size, output_size)

    out = mlp_forward(x, params, block_batch=32)
    out = jax.block_until_ready(out)

    ref = mlp_reference(x, params)
    assert out.shape == (batch, output_size)
    assert jnp.allclose(out, ref, atol=1e-2, rtol=1e-2), "mismatch vs reference"

    print("KERNEL_OK")
</pallas_src>

<mosaic_0001>
module attributes {stable_mosaic.version = 11 : i64} {
  func.func @mlp_kernel(%arg0: i32, %arg1: memref<32x128xbf16, #tpu.memory_space<vmem>>, %arg2: memref<128x128xbf16, #tpu.memory_space<vmem>>, %arg3: memref<1x128xf32, #tpu.memory_space<vmem>>, %arg4: memref<128x128xbf16, #tpu.memory_space<vmem>>, %arg5: memref<1x128xf32, #tpu.memory_space<vmem>>, %arg6: memref<128x128xbf16, #tpu.memory_space<vmem>>, %arg7: memref<1x128xf32, #tpu.memory_space<vmem>>, %arg8: memref<32x128xf32, #tpu.memory_space<vmem>>) attributes {dimension_semantics = [#tpu.dimension_semantics<parallel>], iteration_bounds = array<i64: 2>, scalar_prefetch = 0 : i64, scratch_operands = 0 : i64, tpu.core_type = #tpu.core_type<tc>, window_params = [{transform_indices = @transform_0, window_bounds = array<i64: 32, 128>}, {pipeline_mode = #tpu.pipeline_mode<synchronous>, transform_indices = @transform_1, window_bounds = array<i64: 128, 128>}, {pipeline_mode = #tpu.pipeline_mode<synchronous>, transform_indices = @transform_2, window_bounds = array<i64: 1, 128>}, {pipeline_mode = #tpu.pipeline_mode<synchronous>, transform_indices = @transform_3, window_bounds = array<i64: 128, 128>}, {pipeline_mode = #tpu.pipeline_mode<synchronous>, transform_indices = @transform_4, window_bounds = array<i64: 1, 128>}, {pipeline_mode = #tpu.pipeline_mode<synchronous>, transform_indices = @transform_5, window_bounds = array<i64: 128, 128>}, {pipeline_mode = #tpu.pipeline_mode<synchronous>, transform_indices = @transform_6, window_bounds = array<i64: 1, 128>}, {transform_indices = @transform_7, window_bounds = array<i64: 32, 128>}]} {
    %c0 = arith.constant 0 : index
    %c0_0 = arith.constant 0 : index
    %0 = vector.load %arg1[%c0, %c0_0] : memref<32x128xbf16, #tpu.memory_space<vmem>>, vector<32x128xbf16>
    %c0_1 = arith.constant 0 : index
    %c0_2 = arith.constant 0 : index
    %1 = vector.load %arg2[%c0_1, %c0_2] : memref<128x128xbf16, #tpu.memory_space<vmem>>, vector<128x128xbf16>
    %cst = arith.constant dense<0.000000e+00> : vector<32x128xf32>
    %2 = tpu.matmul %0, %1, %cst {dimension_numbers = #tpu.dot_dimension_numbers<[1], [0], [0], [1], [0, 0, 1, 1], [], []>} : vector<32x128xbf16>, vector<128x128xbf16>, vector<32x128xf32> -> vector<32x128xf32>
    %c0_3 = arith.constant 0 : index
    %c0_4 = arith.constant 0 : index
    %3 = vector.load %arg3[%c0_3, %c0_4] : memref<1x128xf32, #tpu.memory_space<vmem>>, vector<1x128xf32>
    %4 = vector.broadcast %3 : vector<1x128xf32> to vector<32x128xf32>
    %5 = arith.addf %2, %4 : vector<32x128xf32>
    %cst_5 = arith.constant 0.000000e+00 : f32
    %6 = vector.broadcast %cst_5 : f32 to vector<32x128xf32>
    %7 = arith.cmpf oge, %5, %6 : vector<32x128xf32>
    %cst_6 = arith.constant 0.00999999977 : f32
    %8 = vector.broadcast %cst_6 : f32 to vector<32x128xf32>
    %9 = arith.mulf %8, %5 : vector<32x128xf32>
    %10 = arith.select %7, %5, %9 : vector<32x128xi1>, vector<32x128xf32>
    %11 = arith.truncf %10 : vector<32x128xf32> to vector<32x128xbf16>
    %c0_7 = arith.constant 0 : index
    %c0_8 = arith.constant 0 : index
    %12 = vector.load %arg4[%c0_7, %c0_8] : memref<128x128xbf16, #tpu.memory_space<vmem>>, vector<128x128xbf16>
    %cst_9 = arith.constant dense<0.000000e+00> : vector<32x128xf32>
    %13 = tpu.matmul %11, %12, %cst_9 {dimension_numbers = #tpu.dot_dimension_numbers<[1], [0], [0], [1], [0, 0, 1, 1], [], []>} : vector<32x128xbf16>, vector<128x128xbf16>, vector<32x128xf32> -> vector<32x128xf32>
    %c0_10 = arith.constant 0 : index
    %c0_11 = arith.constant 0 : index
    %14 = vector.load %arg5[%c0_10, %c0_11] : memref<1x128xf32, #tpu.memory_space<vmem>>, vector<1x128xf32>
    %15 = vector.broadcast %14 : vector<1x128xf32> to vector<32x128xf32>
    %16 = arith.addf %13, %15 : vector<32x128xf32>
    %cst_12 = arith.constant 0.000000e+00 : f32
    %17 = vector.broadcast %cst_12 : f32 to vector<32x128xf32>
    %18 = arith.cmpf oge, %16, %17 : vector<32x128xf32>
    %cst_13 = arith.constant 0.00999999977 : f32
    %19 = vector.broadcast %cst_13 : f32 to vector<32x128xf32>
    %20 = arith.mulf %19, %16 : vector<32x128xf32>
    %21 = arith.select %18, %16, %20 : vector<32x128xi1>, vector<32x128xf32>
    %22 = arith.truncf %21 : vector<32x128xf32> to vector<32x128xbf16>
    %c0_14 = arith.constant 0 : index
    %c0_15 = arith.constant 0 : index
    %23 = vector.load %arg6[%c0_14, %c0_15] : memref<128x128xbf16, #tpu.memory_space<vmem>>, vector<128x128xbf16>
    %cst_16 = arith.constant dense<0.000000e+00> : vector<32x128xf32>
    %24 = tpu.matmul %22, %23, %cst_16 {dimension_numbers = #tpu.dot_dimension_numbers<[1], [0], [0], [1], [0, 0, 1, 1], [], []>} : vector<32x128xbf16>, vector<128x128xbf16>, vector<32x128xf32> -> vector<32x128xf32>
    %c0_17 = arith.constant 0 : index
    %c0_18 = arith.constant 0 : index
    %25 = vector.load %arg7[%c0_17, %c0_18] : memref<1x128xf32, #tpu.memory_space<vmem>>, vector<1x128xf32>
    %26 = vector.broadcast %25 : vector<1x128xf32> to vector<32x128xf32>
    %27 = arith.addf %24, %26 : vector<32x128xf32>
    %cst_19 = arith.constant 0.000000e+00 : f32
    %28 = vector.broadcast %cst_19 : f32 to vector<32x128xf32>
    %29 = arith.cmpf oge, %27, %28 : vector<32x128xf32>
    %cst_20 = arith.constant 0.00999999977 : f32
    %30 = vector.broadcast %cst_20 : f32 to vector<32x128xf32>
    %31 = arith.mulf %30, %27 : vector<32x128xf32>
    %32 = arith.select %29, %27, %31 : vector<32x128xi1>, vector<32x128xf32>
    %c0_21 = arith.constant 0 : index
    %c0_22 = arith.constant 0 : index
    %33 = vector.load %arg8[%c0_21, %c0_22] : memref<32x128xf32, #tpu.memory_space<vmem>>, vector<32x128xf32>
    tpu.vector_store %arg8[%c0_21, %c0_22], %32 {strides = array<i32>} : memref<32x128xf32, #tpu.memory_space<vmem>>, vector<32x128xf32>,
    return
  }
  func.func @transform_0(%arg0: i32) -> (i32, i32) {
    %c0_i32 = arith.constant 0 : i32
    %c0_i32_0 = arith.constant 0 : i32
    return %arg0, %c0_i32 : i32, i32
  }
  func.func @transform_1(%arg0: i32) -> (i32, i32) {
    %c0_i32 = arith.constant 0 : i32
    %c0_i32_0 = arith.constant 0 : i32
    %c0_i32_1 = arith.constant 0 : i32
    return %c0_i32, %c0_i32_0 : i32, i32
  }
  func.func @transform_2(%arg0: i32) -> (i32, i32) {
    %c0_i32 = arith.constant 0 : i32
    %c0_i32_0 = arith.constant 0 : i32
    %c0_i32_1 = arith.constant 0 : i32
    return %c0_i32, %c0_i32_0 : i32, i32
  }
  func.func @transform_3(%arg0: i32) -> (i32, i32) {
    %c0_i32 = arith.constant 0 : i32
    %c0_i32_0 = arith.constant 0 : i32
    %c0_i32_1 = arith.constant 0 : i32
    return %c0_i32, %c0_i32_0 : i32, i32
  }
  func.func @transform_4(%arg0: i32) -> (i32, i32) {
    %c0_i32 = arith.constant 0 : i32
    %c0_i32_0 = arith.constant 0 : i32
    %c0_i32_1 = arith.constant 0 : i32
    return %c0_i32, %c0_i32_0 : i32, i32
  }
  func.func @transform_5(%arg0: i32) -> (i32, i32) {
    %c0_i32 = arith.constant 0 : i32
    %c0_i32_0 = arith.constant 0 : i32
    %c0_i32_1 = arith.constant 0 : i32
    return %c0_i32, %c0_i32_0 : i32, i32
  }
  func.func @transform_6(%arg0: i32) -> (i32, i32) {
    %c0_i32 = arith.constant 0 : i32
    %c0_i32_0 = arith.constant 0 : i32
    %c0_i32_1 = arith.constant 0 : i32
    return %c0_i32, %c0_i32_0 : i32, i32
  }
  func.func @transform_7(%arg0: i32) -> (i32, i32) {
    %c0_i32 = arith.constant 0 : i32
    %c0_i32_0 = arith.constant 0 : i32
    return %arg0, %c0_i32 : i32, i32
  }
}

</mosaic_0001>

<bundles_post_ra>
// kernel: mlp_forward.1
= control target key start
LH: loop header
LB: loop body
LE: loop exit
PB: predicated region body
PF: predicated region fallthrough
CT: control target
= control target key end

     0   :  { %s971_s24 = smov 0   ;;  %s1077_s0 = inlined_call_operand.vmem [shape: bf16[64,128], index: 0, kind: input, shape index: {}]   ;;  %s1078_s1 = inlined_call_operand.vmem [shape: bf16[128,128], index: 1, kind: input, shape index: {}]   ;;  %s1079_s2 = inlined_call_operand.vmem [shape: f32[1,128], index: 2, kind: input, shape index: {}]   ;;  %s1080_s3 = inlined_call_operand.vmem [shape: bf16[128,128], index: 3, kind: input, shape index: {}]   ;;  %s1081_s4 = inlined_call_operand.vmem [shape: f32[1,128], index: 4, kind: input, shape index: {}]   ;;  %s1082_s5 = inlined_call_operand.vmem [shape: bf16[128,128], index: 5, kind: input, shape index: {}]   ;;  %s1083_s6 = inlined_call_operand.vmem [shape: f32[1,128], index: 6, kind: input, shape index: {}]   ;;  %s1084_s7 = inlined_call_operand.vmem [shape: f32[64,128], index: 7, kind: output, shape index: {}]  }
   0x1 LB: > { %s759_s25 = sadd.s32 4294967295, %s929_s24   ;;  %p763_p0 = scmp.ge.s32.totalorder %s929_s24, 1  ;;  %s929_s24 = sphi %s971_s24, %s17_s24  }
   0x2   : > { %p238_p1 = scmp.lt.s32.totalorder %s929_s24, 3 }
   0x4   : > { %p239_p2 = pnand %p763_p0, %p238_p1 }
   0x5   : > { %v897_v0 = vld [vmem:[%s1078_s1] sm:$0xff] (!%p239_p2)   ;;  %s764_s28 = sshll.u32 (!%p239_p2), %s759_s25, 2  ;;  %v898_v1 = vld [vmem:[%s1078_s1 + $0x8] sm:$0xff] (!%p239_p2)   ;;  %v899_v2 = vld [vmem:[%s1078_s1 + $0x10] sm:$0xff] (!%p239_p2)  }
   0x6   : > { %242 = sbr.rel (%p239_p2) target bundleno = 705 (0x2c1), region = 48  ;;  %p271_p3 = scmp.lt.s32.totalorder (!%p239_p2), %s764_s28, 7  ;;  %829 = vmatprep.subr.bf16.mxu0 (!%p239_p2), %v897_v0  ;;  %v900_v3 = vld [vmem:[%s1078_s1 + $0x18] sm:$0xff] (!%p239_p2)   ;;  %v907_v5 = vld [vmem:[%s1080_s3] sm:$0xff] (!%p239_p2)   ;;  %v908_v6 = vld [vmem:[%s1080_s3 + $0x8] sm:$0xff] (!%p239_p2)  }
   0x7   : > { %830 = vmatpush3.bf16.msra.mxu0 (!%p239_p2), %v897_v0  ;;  %v901_v7 = vld [vmem:[%s1078_s1 + $0x20] sm:$0xff] (!%p239_p2)   ;;  %849 = vmatprep.subr.bf16.mxu1 (!%p239_p2), %v907_v5  ;;  %v902_v8 = vld [vmem:[%s1078_s1 + $0x28] sm:$0xff] (!%p239_p2)   ;;  %v909_v9 = vld [vmem:[%s1080_s3 + $0x10] sm:$0xff] (!%p239_p2)  }
   0x8   : > { %831 = vmatprep.subr.bf16.mxu0 (!%p239_p2), %v898_v1  ;;  %850 = vmatpush3.bf16.msra.mxu1 (!%p239_p2), %v907_v5  ;;  %v910_v10 = vld [vmem:[%s1080_s3 + $0x18] sm:$0xff] (!%p239_p2)   ;;  %v903_v11 = vld [vmem:[%s1078_s1 + $0x30] sm:$0xff] (!%p239_p2)   ;;  %v911_v12 = vld [vmem:[%s1080_s3 + $0x20] sm:$0xff] (!%p239_p2)  }
   0x9   : > { %851 = vmatprep.subr.bf16.mxu1 (!%p239_p2), %v908_v6  ;;  %v904_v13 = vld [vmem:[%s1078_s1 + $0x38] sm:$0xff] (!%p239_p2)   ;;  %v912_v15 = vld [vmem:[%s1080_s3 + $0x28] sm:$0xff] (!%p239_p2)   ;;  %v913_v16 = vld [vmem:[%s1080_s3 + $0x30] sm:$0xff] (!%p239_p2)  }
   0xa   : > { %v914_v17 = vld [vmem:[%s1080_s3 + $0x38] sm:$0xff] (!%p239_p2)   ;;  %v915_v18 = vld [vmem:[%s1082_s5] sm:$0xff] (!%p239_p2)   ;;  %v916_v19 = vld [vmem:[%s1082_s5 + $0x8] sm:$0xff] (!%p239_p2)  }
   0xb   : > { %832 = vmatpush3.bf16.msra.mxu0 (!%p239_p2), %v898_v1  ;;  %v917_v20 = vld [vmem:[%s1082_s5 + $0x10] sm:$0xff] (!%p239_p2)   ;;  %v918_v21 = vld [vmem:[%s1082_s5 + $0x18] sm:$0xff] (!%p239_p2)   ;;  %v919_v22 = vld [vmem:[%s1082_s5 + $0x20] sm:$0xff] (!%p239_p2)  }
   0xc   : > { %833 = vmatprep.subr.bf16.mxu0 (!%p239_p2), %v899_v2  ;;  %852 = vmatpush3.bf16.msra.mxu1 (!%p239_p2), %v908_v6  ;;  %v768_v23 = vld [vmem:[%s1079_s2] ss:$0 sm:$0xff] (!%p239_p2)  ;;  %v920_v42 = vld [vmem:[%s1082_s5 + $0x28] sm:$0xff] (!%p239_p2)   ;;  %v921_v43 = vld [vmem:[%s1082_s5 + $0x30] sm:$0xff] (!%p239_p2)  }
   0xd   : > { %s1086_s28 = smov (!%p271_p3, %s764_s28), 7  ;;  %853 = vmatprep.subr.bf16.mxu1 %v909_v9  ;;  %v922_v44 = vld [vmem:[%s1082_s5 + $0x38] sm:$0xff]   ;;  %v779_v45 = vld [vmem:[%s1081_s4] ss:$0 sm:$0xff] }
   0xe   : > { %s765_s10 = sshll.u32 %s1086_s28, 2  ;;  %v788_v0 = vld [vmem:[%s1083_s6] ss:$0 sm:$0xff]  ;;  %s767_s20 = sshll.u32 %s1086_s28, 3 }
   0xf   : > { %s994_s13 = scalar_lea.vmem %s1077_s0, %s765_s10  ;;  %834 = vmatpush3.bf16.msra.mxu0 %v899_v2  ;;  %s280_s23 = scalar_lea.vmem %s1084_s7, %s767_s20 }
  0x10   : > { %v905_v4 = vld [vmem:[%s994_s13] sm:$0xff]   ;;  %835 = vmatprep.subr.bf16.mxu0 %v900_v3  ;;  %854 = vmatpush3.bf16.msra.mxu1 %v909_v9  ;;  %v906_v14 = vld [vmem:[%s994_s13 + $0x8] sm:$0xff]  }
  0x11   : > { %845 = vmatprep.mubr.bf16.mxu0 %v905_v4  ;;  %855 = vmatprep.subr.bf16.mxu1 %v910_v10 }
  0x13   : > { %836 = vmatpush3.bf16.msra.mxu0 %v900_v3 }
  0x14   : > { %837 = vmatprep.subr.bf16.mxu0 %v901_v7  ;;  %856 = vmatpush3.bf16.msra.mxu1 %v910_v10 }
  0x15   : > { %857 = vmatprep.subr.bf16.mxu1 %v911_v12 }
  0x17   : > { %838 = vmatpush3.bf16.msra.mxu0 %v901_v7 }
  0x18   : > { %839 = vmatprep.subr.bf16.mxu0 %v902_v8  ;;  %858 = vmatpush3.bf16.msra.mxu1 %v911_v12 }
  0x19   : > { %859 = vmatprep.subr.bf16.mxu1 %v912_v15 }
  0x1b   : > { %840 = vmatpush3.bf16.msra.mxu0 %v902_v8 }
  0x1c   : > { %841 = vmatprep.subr.bf16.mxu0 %v903_v11  ;;  %860 = vmatpush3.bf16.msra.mxu1 %v912_v15 }
  0x1d   : > { %861 = vmatprep.subr.bf16.mxu1 %v913_v16 }
  0x1f   : > { %842 = vmatpush3.bf16.msra.mxu0 %v903_v11 }
  0x20   : > { %843 = vmatprep.subr.bf16.mxu0 %v904_v13  ;;  %862 = vmatpush3.bf16.msra.mxu1 %v913_v16 }
  0x21   : > { %863 = vmatprep.subr.bf16.mxu1 %v914_v17 }
  0x23   : > { %844 = vmatpush3.bf16.msra.mxu0 %v904_v13 }
  0x24   : > { %864 = vmatpush3.bf16.msra.mxu1 %v914_v17  ;;  %869 = vmatprep.subr.bf16.mxu0 %v915_v18 }
  0x26   : > { %846 = vmatmul.mubr.bf16.vlgmr.msra.gmra.mrb[0].mxu0 %v906_v14 }
  0x27   : > { %870 = vmatpush3.bf16.msra.mxu0 %v915_v18 }
  0x28   : > { %871 = vmatprep.subr.bf16.mxu0 %v916_v19 }
  0x2b   : > { %872 = vmatpush3.bf16.msra.mxu0 %v916_v19 }
  0x2c   : > { %873 = vmatprep.subr.bf16.mxu0 %v917_v20 }
  0x2f   : > { %874 = vmatpush3.bf16.msra.mxu0 %v917_v20 }
  0x30   : > { %875 = vmatprep.subr.bf16.mxu0 %v918_v21 }
  0x33   : > { %876 = vmatpush3.bf16.msra.mxu0 %v918_v21 }
  0x34   : > { %877 = vmatprep.subr.bf16.mxu0 %v919_v22 }
  0x37   : > { %878 = vmatpush3.bf16.msra.mxu0 %v919_v22 }
  0x38   : > { %879 = vmatprep.subr.bf16.mxu0 %v920_v42 }
  0x3b   : > { %880 = vmatpush3.bf16.msra.mxu0 %v920_v42 }
  0x3c   : > { %881 = vmatprep.subr.bf16.mxu0 %v921_v43 }
  0x3f   : > { %882 = vmatpush3.bf16.msra.mxu0 %v921_v43 }
  0x40   : > { %883 = vmatprep.subr.bf16.mxu0 %v922_v44 }
  0x43   : > { %884 = vmatpush3.bf16.msra.mxu0 %v922_v44 }
  0xf9   : > { %v847_v24 = vpop.f32.mrb[0].mxu0 }
  0xfa   : > { %v413_v25 = vadd.f32 %v847_v24, %v768_v23  ;;  %v404_v26 = vpop.f32.mrb[1].mxu0 }
  0xfb   : > { %v405_v27 = vadd.f32 %v768_v23, %v404_v26  ;;  %v848_v28 = vpop.f32.mrb[2].mxu0 }
  0xfc   : > { %v425_v29 = vmul.f32 0.01, %v413_v25  ;;  %v416_v30 = vadd.f32 %v848_v28, %v768_v23  ;;  %v407_v31 = vpop.f32.mrb[3].mxu0  ;;  %vm421_vm0 = vcmp.ge.f32.partialorder %v413_v25, 0.0 }
  0xfd   : > { %v423_v32 = vmul.f32 0.01, %v405_v27  ;;  %v408_v33 = vadd.f32 %v768_v23, %v407_v31  ;;  %vm419_vm2 = vcmp.ge.f32.partialorder %v405_v27, 0.0 }
  0xfe   : > { %vm422_vm1 = vcmp.ge.f32.partialorder %v416_v30, 0.0  ;;  %v426_v34 = vmul.f32 0.01, %v416_v30  ;;  %v429_v36 = vsel %vm421_vm0, %v413_v25, %v425_v29 }
  0xff   : > { %v424_v35 = vmul.f32 0.01, %v408_v33  ;;  %vm420_vm3 = vcmp.ge.f32.partialorder %v408_v33, 0.0  ;;  %v427_v38 = vsel %vm419_vm2, %v405_v27, %v423_v32 }
 0x100   : > { %v430_v37 = vsel %vm422_vm1, %v416_v30, %v426_v34 }
 0x101   : > { %v428_v39 = vsel %vm420_vm3, %v408_v33, %v424_v35  ;;  %v432_v40 = vpack.c.bf16 %v430_v37, %v429_v36 }
 0x102   : > { %v431_v41 = vpack.c.bf16 %v428_v39, %v427_v38 }
 0x104   : > { %865 = vmatprep.mubr.bf16.mxu1 %v431_v41 }
 0x105   : > { %866 = vmatmul.mubr.bf16.vlgmr.msra.gmra.mrb[0].mxu1 %v432_v40 }
 0x1d8   : > { %v867_v46 = vpop.f32.mrb[0].mxu1 }
 0x1d9   : > { %v547_v47 = vadd.f32 %v867_v46, %v779_v45  ;;  %v538_v48 = vpop.f32.mrb[1].mxu1 }
 0x1da   : > { %v539_v49 = vadd.f32 %v779_v45, %v538_v48  ;;  %v868_v50 = vpop.f32.mrb[2].mxu1 }
 0x1db   : > { %v559_v51 = vmul.f32 0.01, %v547_v47  ;;  %v550_v52 = vadd.f32 %v868_v50, %v779_v45  ;;  %v541_v53 = vpop.f32.mrb[3].mxu1  ;;  %vm555_vm4 = vcmp.ge.f32.partialorder %v547_v47, 0.0 }
 0x1dc   : > { %v557_v54 = vmul.f32 0.01, %v539_v49  ;;  %v542_v55 = vadd.f32 %v779_v45, %v541_v53  ;;  %vm553_vm5 = vcmp.ge.f32.partialorder %v539_v49, 0.0 }
 0x1dd   : > { %vm556_vm6 = vcmp.ge.f32.partialorder %v550_v52, 0.0  ;;  %v560_v56 = vmul.f32 0.01, %v550_v52  ;;  %v563_v58 = vsel %vm555_vm4, %v547_v47, %v559_v51 }
 0x1de   : > { %vm554_vm7 = vcmp.ge.f32.partialorder %v542_v55, 0.0  ;;  %v558_v57 = vmul.f32 0.01, %v542_v55  ;;  %v561_v61 = vsel %vm553_vm5, %v539_v49, %v557_v54 }
 0x1df   : > { %v564_v59 = vsel %vm556_vm6, %v550_v52, %v560_v56 }
 0x1e0   : > { %v566_v60 = vpack.c.bf16 %v564_v59, %v563_v58  ;;  %v562_v62 = vsel %vm554_vm7, %v542_v55, %v558_v57 }
 0x1e1   : > { %v565_v63 = vpack.c.bf16 %v562_v62, %v561_v61 }
 0x1e3   : > { %885 = vmatprep.mubr.bf16.mxu0 %v565_v63 }
 0x1e4   : > { %886 = vmatmul.mubr.bf16.vlgmr.msra.gmra.mrb[4].mxu0 %v566_v60 }
 0x2b7   : > { %v887_v1 = vpop.f32.mrb[4].mxu0 }
 0x2b8   : > { %v681_v2 = vadd.f32 %v887_v1, %v788_v0  ;;  %v672_v3 = vpop.f32.mrb[5].mxu0 }
 0x2b9   : > { %v673_v4 = vadd.f32 %v788_v0, %v672_v3  ;;  %v888_v5 = vpop.f32.mrb[6].mxu0 }
 0x2ba   : > { %v684_v6 = vadd.f32 %v888_v5, %v788_v0  ;;  %v675_v7 = vpop.f32.mrb[7].mxu0  ;;  %vm689_vm9 = vcmp.ge.f32.partialorder %v681_v2, 0.0  ;;  %v693_v10 = vmul.f32 0.01, %v681_v2 }
 0x2bb   : > { %vm687_vm8 = vcmp.ge.f32.partialorder %v673_v4, 0.0  ;;  %v691_v8 = vmul.f32 0.01, %v673_v4  ;;  %v676_v9 = vadd.f32 %v788_v0, %v675_v7 }
 0x2bc   : > { %v694_v12 = vmul.f32 0.01, %v684_v6  ;;  %vm690_vm11 = vcmp.ge.f32.partialorder %v684_v6, 0.0  ;;  %v697_v15 = vsel %vm689_vm9, %v681_v2, %v693_v10 }
 0x2bd   : > { %v695_v11 = vsel %vm687_vm8, %v673_v4, %v691_v8  ;;  %vm688_vm10 = vcmp.ge.f32.partialorder %v676_v9, 0.0  ;;  %v692_v13 = vmul.f32 0.01, %v676_v9  ;;  %701 = vst [vmem:[%s280_s23 + $0x10] sm:$0xff] %v697_v15 }
 0x2be   : > { %699 = vst [vmem:[%s280_s23] sm:$0xff] %v695_v11  ;;  %v698_v16 = vsel %vm690_vm11, %v684_v6, %v694_v12 }
 0x2bf   : > { %v696_v14 = vsel %vm688_vm10, %v676_v9, %v692_v13  ;;  %702 = vst [vmem:[%s280_s23 + $0x18] sm:$0xff] %v698_v16 }
 0x2c0   : > { %700 = vst [vmem:[%s280_s23 + $0x8] sm:$0xff] %v696_v14 }
 0x2c1 PF: > { %s17_s24 = sadd.s32 1, %s929_s24  }
 0x2c2   : > { %p14_p4 = scmp.ge.s32.totalorder %s17_s24, 4  }
 0x2c4   :  { %16 = sbr.rel (!%p14_p4) target bundleno = 1 (0x1), region = 78 }

</bundles_post_ra>
